<compile_context>
chip_gen: v6e
topology: v6e:2x2x1
jax: 0.10.0
libtpu: 0.0.40
codegen_flags: <defaults>
</compile_context>

<pallas_src>
import math

import jax
import jax.numpy as jnp
from jax.experimental import pallas as pl
from jax.experimental.pallas import tpu as pltpu


def _bdot(a, b):
    """MXU matmul with bf16 operands and f32 accumulation."""
    return jnp.dot(a.astype(jnp.bfloat16), b.astype(jnp.bfloat16),
                   preferred_element_type=jnp.float32)


def _vmem_capacity_bytes():
    try:
        return int(pltpu.get_tpu_info().vmem_capacity_bytes)
    except Exception:  # pragma: no cover - conservative fallback
        return 64 << 20


def _vmem_limit(blocks, extra_bytes=0):
    """Generation-aware scoped-VMEM limit from the double-buffered blocks."""
    total = 0
    for shape, dtype in blocks:
        total += math.prod(shape) * jnp.dtype(dtype).itemsize
    need = 2 * total + extra_bytes + (2 << 20)
    cap = _vmem_capacity_bytes()
    ceiling = cap - cap // 8          # 112 MiB on 128-MiB parts, 56 MiB on v7x
    return int(min(max(need, 8 << 20), ceiling))


# ----------------------------------------------------------------------------
# Fused kernel 1: graph Laplacian + full Chebyshev conv stack (+bias, brelu).
#   adj = exp(-(||xi||^2 - 2 xi.xj + ||xj||^2)),  V = D^{-1/2} adj D^{-1/2}
#   L = I - V;  T0 = x, T1 = L x, Tk = 2 L T_{k-1} - T_{k-2}
#   L@t is evaluated as t - V@t (identity folded into the recurrence).
#   out_i = [T0|T1|...|T_{K-1}] @ W_i(reshaped) + b_i
# ----------------------------------------------------------------------------
def laplacian_cheb_stack(x_pts, cat, conv_w, conv_b, relu_b):
    """x_pts: (B,N,C) f32 point features; cat: (B,) int32 category id.

    conv_w[i]: (K_i, Fin_i, F_i) with Fin_0 == C + 16
    conv_b[i]: (1, F_i);  relu_b[i]: (1, N, F_i)
    Returns (L, raw_list, x1_act, act_last).
    """
    B, N, C = x_pts.shape
    nL = len(conv_w)
    assert nL >= 2
    F = [int(w.shape[2]) for w in conv_w]
    Ks = [int(w.shape[0]) for w in conv_w]
    assert conv_w[0].shape[1] == C + 16
    want_x1 = nL > 2                     # for nL == 2, x1 == last activation
    f32, bf16 = jnp.float32, jnp.bfloat16

    # Weights reshaped so each layer does ONE (N, K*Fin) @ (K*Fin, F) matmul.
    w0 = conv_w[0].reshape(Ks[0] * (C + 16), F[0]).astype(bf16)

    in_arrays = [x_pts, w0, conv_b[0], relu_b[0]]
    in_specs = [
        pl.BlockSpec((1, N, C), lambda b, c: (b, 0, 0)),
        pl.BlockSpec(w0.shape, lambda b, c: (0, 0)),
        pl.BlockSpec((1, F[0]), lambda b, c: (0, 0)),
        pl.BlockSpec((1, N, F[0]), lambda b, c: (0, 0, 0)),
    ]
    blocks = [((1, N, C), f32), (w0.shape, bf16),
              ((1, F[0]), f32), ((1, N, F[0]), f32)]
    for i in range(1, nL):
        wi = conv_w[i].reshape(Ks[i] * F[i - 1], F[i]).astype(bf16)
        in_arrays += [wi, conv_b[i], relu_b[i]]
        in_specs += [
            pl.BlockSpec(wi.shape, lambda b, c: (0, 0)),
            pl.BlockSpec((1, F[i]), lambda b, c: (0, 0)),
            pl.BlockSpec((1, N, F[i]), lambda b, c: (0, 0, 0)),
        ]
        blocks += [(wi.shape, bf16), ((1, F[i]), f32), ((1, N, F[i]), f32)]
    n_in = len(in_arrays)

    out_shapes = [jax.ShapeDtypeStruct((B, N, N), f32)]
    out_specs = [pl.BlockSpec((1, N, N), lambda b, c: (b, 0, 0))]
    blocks += [((1, N, N), f32)]
    for i in range(nL):                             # raw (pre-relu) reg outputs
        out_shapes.append(jax.ShapeDtypeStruct((B, N, F[i]), f32))
        out_specs.append(pl.BlockSpec((1, N, F[i]), lambda b, c: (b, 0, 0)))
        blocks.append(((1, N, F[i]), f32))
    if want_x1:
        out_shapes.append(jax.ShapeDtypeStruct((B, N, F[1]), bf16))
        out_specs.append(pl.BlockSpec((1, N, F[1]), lambda b, c: (b, 0, 0)))
        blocks.append(((1, N, F[1]), bf16))
    out_shapes.append(jax.ShapeDtypeStruct((B, N, F[-1]), bf16))
    out_specs.append(pl.BlockSpec((1, N, F[-1]), lambda b, c: (b, 0, 0)))
    blocks.append(((1, N, F[-1]), bf16))

    def kernel(cat_ref, *refs):
        in_refs, out_refs = refs[:n_in], refs[n_in:]
        x_ref, w0_ref, b0_ref, rb0_ref = in_refs[0:4]
        rest = in_refs[4:]
        L_ref = out_refs[0]
        raw_refs = out_refs[1:1 + nL]
        x1_ref = out_refs[1 + nL] if want_x1 else None
        last_ref = out_refs[-1]

        # ---- graph Laplacian (f32 exp/rsqrt path) ----
        pts = x_ref[0].astype(f32)                                   # (N, C)
        inner = jax.lax.dot_general(pts, pts, (((1,), (1,)), ((), ())),
                                    preferred_element_type=f32)      # (N, N)
        sq = jnp.sum(pts * pts, axis=-1, keepdims=True)              # (N, 1)
        adj = jnp.exp(-(sq - 2.0 * inner + jnp.transpose(sq)))       # (N, N)
        d_is = jax.lax.rsqrt(jnp.sum(adj, axis=1, keepdims=True))    # D^{-1/2}
        v = d_is * adj * jnp.transpose(d_is)                         # (N, N)
        # f32 L = I - V written once for reg_L; the eye only exists here.
        row = jax.lax.broadcasted_iota(jnp.int32, (N, N), 0)
        col = jax.lax.broadcasted_iota(jnp.int32, (N, N), 1)
        L_ref[0] = jnp.where(row == col, 1.0 - v, -v).astype(L_ref.dtype)
        Vb = v.astype(bf16)                    # bf16 MXU operand, f32 residual

        def lap_apply(t):                      # L @ t  ==  t - V @ t
            return t - _bdot(Vb, t)

        def cheb_slab(t0, K):
            ts = [t0]
            if K > 1:
                t1 = lap_apply(t0)
                ts.append(t1)
            for _ in range(2, K):
                t2 = 2.0 * lap_apply(t1) - t0
                ts.append(t2)
                t0, t1 = t1, t2
            return ts[0] if len(ts) == 1 else jnp.concatenate(ts, axis=-1)

        # ---- layer 0: fused (points | one-hot) input, single Cheb stream ----
        cat_b = cat_ref[pl.program_id(0)]
        onehot = (jax.lax.broadcasted_iota(jnp.int32, (N, 16), 1)
                  == cat_b).astype(f32)                              # (N, 16)
        t0 = jnp.concatenate([pts, onehot], axis=-1)                 # (N, C+16)
        slab = cheb_slab(t0, Ks[0])                                  # (N, K*Fin)
        out = _bdot(slab, w0_ref[...]) + b0_ref[...]
        raw_refs[0][0] = out.astype(raw_refs[0].dtype)
        # TODO(synk): nn.Dropout is identity in eval mode; training-mode
        # dropout is not modelled here.
        act = jnp.maximum(out + rb0_ref[0], 0.0)

        # ---- layers 1..nL-1 ----
        for i in range(1, nL):
            w_ref, b_ref, rb_ref = rest[3 * (i - 1):3 * (i - 1) + 3]
            slab = cheb_slab(act, Ks[i])
            out = _bdot(slab, w_ref[...]) + b_ref[...]
            raw_refs[i][0] = out.astype(raw_refs[i].dtype)
            act = jnp.maximum(out + rb_ref[0], 0.0)
            if want_x1 and i == 1:
                x1_ref[0] = act.astype(x1_ref.dtype)
        last_ref[0] = act.astype(last_ref.dtype)

    grid_spec = pltpu.PrefetchScalarGridSpec(
        num_scalar_prefetch=1,
        grid=(B,),
        in_specs=in_specs,
        out_specs=tuple(out_specs),
    )
    # Laplacian intermediates: inner/adj/v/L-value/iotas f32 + Vb bf16 ~ 26B/elem
    lap_extra = 26 * N * N
    outs = pl.pallas_call(
        kernel,
        grid_spec=grid_spec,
        out_shape=tuple(out_shapes),
        compiler_params=pltpu.CompilerParams(
            dimension_semantics=("parallel",),
            vmem_limit_bytes=_vmem_limit(blocks, extra_bytes=lap_extra),
        ),
    )(cat, *in_arrays)

    L = outs[0]
    raws = list(outs[1:1 + nL])
    act_last = outs[-1]
    x1_act = outs[1 + nL] if want_x1 else act_last
    return L, raws, x1_act, act_last


# ----------------------------------------------------------------------------
# Fused kernel 2: full FC head (Linear + bias + b1relu for every layer), with
# batch collapsed into row tiles so weights / biases stay resident.
# ----------------------------------------------------------------------------
def fc_stack(x, x1, fc_w, fc_b, relu_b):
    """x: (B,N,F_last) conv output activation (bf16); x1: (B,N,F1) saved act.

    fc_w[i]: (Fin_i, M_i) with Fin_1 == M_0 + F1 (split into two row blocks).
    fc_b[i]: (1, M_i);  relu_b[i]: (1, N, M_i)
    Returns (raw_list, out) with shapes (B, N, M_i) / (B, N, M_last).
    """
    B, N, Fl = x.shape
    F1 = x1.shape[-1]
    nM = len(fc_w)
    M = [int(w.shape[1]) for w in fc_w]
    f32, bf16 = jnp.float32, jnp.bfloat16

    # Row tile = c*N rows: divides B*N, keeps the per-vertex b2relu bias block
    # broadcastable, and leaves >=2 grid steps when B >= 2 (v7x: both TCs).
    BN = B * N
    c = 1
    for d in range(1, B + 1):
        if B % d == 0 and d * N <= 512 and (B // d) >= 2:
            c = d
    TR = c * N

    # Lane-dense final logits: pad M[-1] up to a multiple of 128 in-kernel,
    # slice in the wrapper (avoids masked vst.msk partial stores).
    Mpad = max(128, -(-M[-1] // 128) * 128)

    xf = x.reshape(BN, Fl)
    x1f = x1.reshape(BN, F1)

    in_arrays = [xf, x1f]
    in_specs = [pl.BlockSpec((TR, Fl), lambda t: (t, 0)),
                pl.BlockSpec((TR, F1), lambda t: (t, 0))]
    blocks = [((TR, Fl), xf.dtype), ((TR, F1), x1f.dtype)]
    for i in range(nM):
        rb = relu_b[i].reshape(N, M[i])                 # resident, no tiling
        if i == 1:
            wa = fc_w[1][:M[0], :].astype(bf16)         # applied to fc0 act
            wb = fc_w[1][M[0]:, :].astype(bf16)         # applied to x1
            assert wb.shape[0] == F1
            params = [wa, wb, fc_b[i], rb]
        else:
            params = [fc_w[i].astype(bf16), fc_b[i], rb]
        for p in params:
            in_arrays.append(p)
            in_specs.append(pl.BlockSpec(p.shape, lambda t: (0, 0)))
            blocks.append((p.shape, p.dtype))
    n_in = len(in_arrays)

    out_shapes = [jax.ShapeDtypeStruct((BN, M[i]), f32) for i in range(nM)]
    out_shapes.append(jax.ShapeDtypeStruct((BN, Mpad), f32))
    out_specs = [pl.BlockSpec((TR, M[i]), lambda t: (t, 0)) for i in range(nM)]
    out_specs.append(pl.BlockSpec((TR, Mpad), lambda t: (t, 0)))
    blocks += [((TR, M[i]), f32) for i in range(nM)] + [((TR, Mpad), f32)]

    def kernel(*refs):
        in_refs, out_refs = refs[:n_in], refs[n_in:]
        x_ref, x1_ref = in_refs[0], in_refs[1]
        raw_refs = out_refs[:nM]
        final_ref = out_refs[nM]

        cur = x_ref[...]          # bf16, fed straight to the MXU (no f32 trip)
        x1t = x1_ref[...]
        idx = 2
        for i in range(nM):
            if i == 1:
                wa, wb, bb, rb = in_refs[idx:idx + 4]
                idx += 4
                out = _bdot(cur, wa[...]) + _bdot(x1t, wb[...])   # fused concat
            else:
                w, bb, rb = in_refs[idx:idx + 3]
                idx += 3
                out = _bdot(cur, w[...])
            out = out + bb[...]
            raw_refs[i][...] = out.astype(raw_refs[i].dtype)
            # TODO(synk): dropout == identity (eval mode).
            if c == 1:
                cur = jnp.maximum(out + rb[...], 0.0)
            else:
                cur = jnp.maximum(out.reshape(c, N, M[i]) + rb[...][None],
                                  0.0).reshape(TR, M[i])
        if Mpad != M[-1]:
            pad = jnp.zeros((TR, Mpad - M[-1]), dtype=cur.dtype)
            cur = jnp.concatenate([cur, pad], axis=-1)
        final_ref[...] = cur.astype(final_ref.dtype)

    outs = pl.pallas_call(
        kernel,
        grid=(BN // TR,),
        in_specs=in_specs,
        out_specs=tuple(out_specs),
        out_shape=tuple(out_shapes),
        compiler_params=pltpu.CompilerParams(
            dimension_semantics=("parallel",),
            vmem_limit_bytes=_vmem_limit(blocks),
        ),
    )(*in_arrays)

    raws = [outs[i].reshape(B, N, M[i]) for i in range(nM)]
    final = outs[nM][:, :M[-1]].reshape(B, N, M[-1])
    return raws, final


# ----------------------------------------------------------------------------
# Full forward pass. Mirrors seg_model.forward: returns (out, reg_x, reg_L).
# (recompute_L defaults to False -> the Laplacian is computed once.)
# ----------------------------------------------------------------------------
def seg_model_forward(x, cat, params, vertice, F, K, M):
    nK, nM = len(K), len(M)
    cat_flat = cat.reshape(-1).astype(jnp.int32)

    L, conv_raws, x1, conv_out = laplacian_cheb_stack(
        x, cat_flat, params["conv_w"], params["conv_b"],
        params["relu_b"][:nK])

    fc_raws, out = fc_stack(conv_out, x1, params["fc_w"], params["fc_b"],
                            params["relu_b"][nK:])

    reg_x = conv_raws + fc_raws
    reg_L = [L] * (nK + nM)
    return out, reg_x, reg_L


if __name__ == "__main__":
    # Small configuration consistent with the module:
    # point features = 6, one-hot(16) -> input_dim = 22 (module default).
    B, N = 2, 16                       # batch, vertice
    point_dim = 6
    F = [32, 32]                       # conv output channels
    K = [3, 3]                         # Chebyshev orders
    M = [32, 16]                       # FC output channels (M[0] == F[1] required
                                       #  by the fc[1] concat in the module)
    input_dim = point_dim + 16         # 22

    key = jax.random.PRNGKey(0)
    keys = jax.random.split(key, 16)
    x = jax.random.normal(keys[0], (B, N, point_dim), dtype=jnp.float32)
    cat = jax.random.randint(keys[1], (B, 1), 0, 16, dtype=jnp.int32)

    # Deterministic synthetic parameters (shapes from seg_model.__init__).
    conv_w, conv_b = [], []
    kidx = 2
    for i in range(len(K)):
        fin = input_dim if i == 0 else F[i - 1]
        conv_w.append(0.1 * jax.random.normal(keys[kidx], (K[i], fin, F[i]),
                                              dtype=jnp.float32)); kidx += 1
        conv_b.append(0.1 * jax.random.normal(keys[kidx], (1, F[i]),
                                              dtype=jnp.float32)); kidx += 1

    fc_in = [F[-1], M[0] + M[0]] + [M[i - 1] for i in range(2, len(M))]
    fc_w, fc_b = [], []
    for i in range(len(M)):
        fc_w.append(0.1 * jax.random.normal(keys[kidx], (fc_in[i], M[i]),
                                            dtype=jnp.float32)); kidx += 1
        fc_b.append(0.1 * jax.random.normal(keys[kidx], (1, M[i]),
                                            dtype=jnp.float32)); kidx += 1

    # b2relu=True -> bias_relus shapes (1, vertice, F_or_M), initialized to zeros.
    relu_b = [jnp.zeros((1, N, r), dtype=jnp.float32) for r in (F + M)]

    params = {"conv_w": conv_w, "conv_b": conv_b,
              "fc_w": fc_w, "fc_b": fc_b, "relu_b": relu_b}

    out, reg_x, reg_L = seg_model_forward(x, cat, params, N, F, K, M)
    jax.block_until_ready(out)
    assert out.shape == (B, N, M[-1])
    assert len(reg_x) == len(K) + len(M) and len(reg_L) == len(K) + len(M)
    print("KERNEL_OK")
</pallas_src>

<mosaic_0001>
module attributes {stable_mosaic.version = 11 : i64} {
  func.func @kernel(%arg0: i32, %arg1: memref<2xi32, #tpu.memory_space<smem>>, %arg2: memref<1x16x6xf32, #tpu.memory_space<vmem>>, %arg3: memref<66x32xbf16, #tpu.memory_space<vmem>>, %arg4: memref<1x32xf32, #tpu.memory_space<vmem>>, %arg5: memref<1x16x32xf32, #tpu.memory_space<vmem>>, %arg6: memref<96x32xbf16, #tpu.memory_space<vmem>>, %arg7: memref<1x32xf32, #tpu.memory_space<vmem>>, %arg8: memref<1x16x32xf32, #tpu.memory_space<vmem>>, %arg9: memref<1x16x16xf32, #tpu.memory_space<vmem>>, %arg10: memref<1x16x32xf32, #tpu.memory_space<vmem>>, %arg11: memref<1x16x32xf32, #tpu.memory_space<vmem>>, %arg12: memref<1x16x32xbf16, #tpu.memory_space<vmem>>) attributes {dimension_semantics = [#tpu.dimension_semantics<parallel>], iteration_bounds = array<i64: 2>, scalar_prefetch = 1 : i64, scratch_operands = 0 : i64, tpu.core_type = #tpu.core_type<tc>, window_params = [{transform_indices = @transform_0, window_bounds = array<i64: 1, 16, 6>}, {pipeline_mode = #tpu.pipeline_mode<synchronous>, transform_indices = @transform_1, window_bounds = array<i64: 66, 32>}, {pipeline_mode = #tpu.pipeline_mode<synchronous>, transform_indices = @transform_2, window_bounds = array<i64: 1, 32>}, {pipeline_mode = #tpu.pipeline_mode<synchronous>, transform_indices = @transform_3, window_bounds = array<i64: 1, 16, 32>}, {pipeline_mode = #tpu.pipeline_mode<synchronous>, transform_indices = @transform_4, window_bounds = array<i64: 96, 32>}, {pipeline_mode = #tpu.pipeline_mode<synchronous>, transform_indices = @transform_5, window_bounds = array<i64: 1, 32>}, {pipeline_mode = #tpu.pipeline_mode<synchronous>, transform_indices = @transform_6, window_bounds = array<i64: 1, 16, 32>}, {transform_indices = @transform_7, window_bounds = array<i64: 1, 16, 16>}, {transform_indices = @transform_8, window_bounds = array<i64: 1, 16, 32>}, {transform_indices = @transform_9, window_bounds = array<i64: 1, 16, 32>}, {transform_indices = @transform_10, window_bounds = array<i64: 1, 16, 32>}]} {
    %c0 = arith.constant 0 : index
    %c0_0 = arith.constant 0 : index
    %c0_1 = arith.constant 0 : index
    %0 = vector.load %arg2[%c0, %c0_0, %c0_1] : memref<1x16x6xf32, #tpu.memory_space<vmem>>, vector<1x16x6xf32>
    %1 = vector.shape_cast %0 : vector<1x16x6xf32> to vector<16x6xf32>
    %cst = arith.constant dense<0.000000e+00> : vector<16x16xf32>
    %2 = tpu.matmul %1, %1, %cst {dimension_numbers = #tpu.dot_dimension_numbers<[1], [1], [0], [0], [0, 0, 1, 0], [], []>} : vector<16x6xf32>, vector<16x6xf32>, vector<16x16xf32> -> vector<16x16xf32>
    %3 = arith.mulf %1, %1 : vector<16x6xf32>
    %cst_2 = arith.constant dense<0.000000e+00> : vector<16xf32>
    %4 = vector.multi_reduction <add>, %3, %cst_2 [1] : vector<16x6xf32> to vector<16xf32>
    %5 = vector.shape_cast %4 : vector<16xf32> to vector<16x1xf32>
    %cst_3 = arith.constant 2.000000e+00 : f32
    %6 = vector.broadcast %cst_3 : f32 to vector<16x16xf32>
    %7 = arith.mulf %6, %2 : vector<16x16xf32>
    %8 = vector.broadcast %5 : vector<16x1xf32> to vector<16x16xf32>
    %9 = arith.subf %8, %7 : vector<16x16xf32>
    %10 = tpu.transpose %5, [1, 0] : vector<16x1xf32> -> vector<1x16xf32>
    %11 = vector.broadcast %10 : vector<1x16xf32> to vector<16x16xf32>
    %12 = arith.addf %9, %11 : vector<16x16xf32>
    %cst_4 = arith.constant 0.000000e+00 : f32
    %13 = vector.broadcast %cst_4 : f32 to vector<16x16xf32>
    %14 = arith.subf %13, %12 : vector<16x16xf32>
    %15 = math.exp %14 : vector<16x16xf32>
    %cst_5 = arith.constant dense<0.000000e+00> : vector<16xf32>
    %16 = vector.multi_reduction <add>, %15, %cst_5 [1] : vector<16x16xf32> to vector<16xf32>
    %17 = vector.shape_cast %16 : vector<16xf32> to vector<16x1xf32>
    %18 = math.rsqrt %17 : vector<16x1xf32>
    %19 = vector.broadcast %18 : vector<16x1xf32> to vector<16x16xf32>
    %20 = arith.mulf %19, %15 : vector<16x16xf32>
    %21 = tpu.transpose %18, [1, 0] : vector<16x1xf32> -> vector<1x16xf32>
    %22 = vector.broadcast %21 : vector<1x16xf32> to vector<16x16xf32>
    %23 = arith.mulf %20, %22 : vector<16x16xf32>
    %24 = tpu.iota {dimensions = array<i32: 0>} : vector<16x16xi32>
    %25 = tpu.iota {dimensions = array<i32: 1>} : vector<16x16xi32>
    %26 = arith.cmpi eq, %24, %25 : vector<16x16xi32>
    %cst_6 = arith.constant 1.000000e+00 : f32
    %27 = vector.broadcast %cst_6 : f32 to vector<16x16xf32>
    %28 = arith.subf %27, %23 : vector<16x16xf32>
    %cst_7 = arith.constant 0.000000e+00 : f32
    %29 = vector.broadcast %cst_7 : f32 to vector<16x16xf32>
    %30 = arith.subf %29, %23 : vector<16x16xf32>
    %31 = arith.select %26, %28, %30 : vector<16x16xi1>, vector<16x16xf32>
    %c0_8 = arith.constant 0 : index
    %c0_9 = arith.constant 0 : index
    %c0_10 = arith.constant 0 : index
    %32 = vector.load %arg9[%c0_8, %c0_9, %c0_10] : memref<1x16x16xf32, #tpu.memory_space<vmem>>, vector<1x16x16xf32>
    %33 = vector.shape_cast %32 : vector<1x16x16xf32> to vector<16x16xf32>
    %34 = vector.shape_cast %31 : vector<16x16xf32> to vector<1x16x16xf32>
    tpu.vector_store %arg9[%c0_8, %c0_9, %c0_10], %34 {strides = array<i32>} : memref<1x16x16xf32, #tpu.memory_space<vmem>>, vector<1x16x16xf32>,
    %35 = arith.truncf %23 : vector<16x16xf32> to vector<16x16xbf16>
    %36 = arith.index_cast %arg0 : i32 to index
    %37 = memref.load %arg1[%36] : memref<2xi32, #tpu.memory_space<smem>>
    %38 = tpu.iota {dimensions = array<i32: 1>} : vector<16x16xi32>
    %39 = vector.broadcast %37 : i32 to vector<16x16xi32>
    %40 = arith.cmpi eq, %38, %39 : vector<16x16xi32>
    %41 = arith.extui %40 : vector<16x16xi1> to vector<16x16xi32>
    %42 = arith.sitofp %41 : vector<16x16xi32> to vector<16x16xf32>
    %43 = tpu.concatenate %1, %42 in 1 : vector<16x6xf32>, vector<16x16xf32> -> vector<16x22xf32>
    %44 = arith.truncf %43 : vector<16x22xf32> to vector<16x22xbf16>
    %cst_11 = arith.constant dense<0.000000e+00> : vector<16x22xf32>
    %45 = tpu.matmul %35, %44, %cst_11 {dimension_numbers = #tpu.dot_dimension_numbers<[1], [0], [0], [1], [0, 0, 1, 1], [], []>} : vector<16x16xbf16>, vector<16x22xbf16>, vector<16x22xf32> -> vector<16x22xf32>
    %46 = arith.subf %43, %45 : vector<16x22xf32>
    %47 = arith.truncf %46 : vector<16x22xf32> to vector<16x22xbf16>
    %cst_12 = arith.constant dense<0.000000e+00> : vector<16x22xf32>
    %48 = tpu.matmul %35, %47, %cst_12 {dimension_numbers = #tpu.dot_dimension_numbers<[1], [0], [0], [1], [0, 0, 1, 1], [], []>} : vector<16x16xbf16>, vector<16x22xbf16>, vector<16x22xf32> -> vector<16x22xf32>
    %49 = arith.subf %46, %48 : vector<16x22xf32>
    %cst_13 = arith.constant 2.000000e+00 : f32
    %50 = vector.broadcast %cst_13 : f32 to vector<16x22xf32>
    %51 = arith.mulf %50, %49 : vector<16x22xf32>
    %52 = arith.subf %51, %43 : vector<16x22xf32>
    %53 = tpu.concatenate %43, %46, %52 in 1 : vector<16x22xf32>, vector<16x22xf32>, vector<16x22xf32> -> vector<16x66xf32>
    %c0_14 = arith.constant 0 : index
    %c0_15 = arith.constant 0 : index
    %54 = vector.load %arg3[%c0_14, %c0_15] : memref<66x32xbf16, #tpu.memory_space<vmem>>, vector<66x32xbf16>
    %55 = arith.truncf %53 : vector<16x66xf32> to vector<16x66xbf16>
    %cst_16 = arith.constant dense<0.000000e+00> : vector<16x32xf32>
    %56 = tpu.matmul %55, %54, %cst_16 {dimension_numbers = #tpu.dot_dimension_numbers<[1], [0], [0], [1], [0, 0, 1, 1], [], []>} : vector<16x66xbf16>, vector<66x32xbf16>, vector<16x32xf32> -> vector<16x32xf32>
    %c0_17 = arith.constant 0 : index
    %c0_18 = arith.constant 0 : index
    %57 = vector.load %arg4[%c0_17, %c0_18] : memref<1x32xf32, #tpu.memory_space<vmem>>, vector<1x32xf32>
    %58 = vector.broadcast %57 : vector<1x32xf32> to vector<16x32xf32>
    %59 = arith.addf %56, %58 : vector<16x32xf32>
    %c0_19 = arith.constant 0 : index
    %c0_20 = arith.constant 0 : index
    %c0_21 = arith.constant 0 : index
    %60 = vector.load %arg10[%c0_19, %c0_20, %c0_21] : memref<1x16x32xf32, #tpu.memory_space<vmem>>, vector<1x16x32xf32>
    %61 = vector.shape_cast %60 : vector<1x16x32xf32> to vector<16x32xf32>
    %62 = vector.shape_cast %59 : vector<16x32xf32> to vector<1x16x32xf32>
    tpu.vector_store %arg10[%c0_19, %c0_20, %c0_21], %62 {strides = array<i32>} : memref<1x16x32xf32, #tpu.memory_space<vmem>>, vector<1x16x32xf32>,
    %c0_22 = arith.constant 0 : index
    %c0_23 = arith.constant 0 : index
    %c0_24 = arith.constant 0 : index
    %63 = vector.load %arg5[%c0_22, %c0_23, %c0_24] : memref<1x16x32xf32, #tpu.memory_space<vmem>>, vector<1x16x32xf32>
    %64 = vector.shape_cast %63 : vector<1x16x32xf32> to vector<16x32xf32>
    %65 = arith.addf %59, %64 : vector<16x32xf32>
    %cst_25 = arith.constant 0.000000e+00 : f32
    %66 = vector.broadcast %cst_25 : f32 to vector<16x32xf32>
    %67 = arith.maximumf %65, %66 : vector<16x32xf32>
    %68 = arith.truncf %67 : vector<16x32xf32> to vector<16x32xbf16>
    %cst_26 = arith.constant dense<0.000000e+00> : vector<16x32xf32>
    %69 = tpu.matmul %35, %68, %cst_26 {dimension_numbers = #tpu.dot_dimension_numbers<[1], [0], [0], [1], [0, 0, 1, 1], [], []>} : vector<16x16xbf16>, vector<16x32xbf16>, vector<16x32xf32> -> vector<16x32xf32>
    %70 = arith.subf %67, %69 : vector<16x32xf32>
    %71 = arith.truncf %70 : vector<16x32xf32> to vector<16x32xbf16>
    %cst_27 = arith.constant dense<0.000000e+00> : vector<16x32xf32>
    %72 = tpu.matmul %35, %71, %cst_27 {dimension_numbers = #tpu.dot_dimension_numbers<[1], [0], [0], [1], [0, 0, 1, 1], [], []>} : vector<16x16xbf16>, vector<16x32xbf16>, vector<16x32xf32> -> vector<16x32xf32>
    %73 = arith.subf %70, %72 : vector<16x32xf32>
    %cst_28 = arith.constant 2.000000e+00 : f32
    %74 = vector.broadcast %cst_28 : f32 to vector<16x32xf32>
    %75 = arith.mulf %74, %73 : vector<16x32xf32>
    %76 = arith.subf %75, %67 : vector<16x32xf32>
    %77 = tpu.concatenate %67, %70, %76 in 1 : vector<16x32xf32>, vector<16x32xf32>, vector<16x32xf32> -> vector<16x96xf32>
    %c0_29 = arith.constant 0 : index
    %c0_30 = arith.constant 0 : index
    %78 = vector.load %arg6[%c0_29, %c0_30] : memref<96x32xbf16, #tpu.memory_space<vmem>>, vector<96x32xbf16>
    %79 = arith.truncf %77 : vector<16x96xf32> to vector<16x96xbf16>
    %cst_31 = arith.constant dense<0.000000e+00> : vector<16x32xf32>
    %80 = tpu.matmul %79, %78, %cst_31 {dimension_numbers = #tpu.dot_dimension_numbers<[1], [0], [0], [1], [0, 0, 1, 1], [], []>} : vector<16x96xbf16>, vector<96x32xbf16>, vector<16x32xf32> -> vector<16x32xf32>
    %c0_32 = arith.constant 0 : index
    %c0_33 = arith.constant 0 : index
    %81 = vector.load %arg7[%c0_32, %c0_33] : memref<1x32xf32, #tpu.memory_space<vmem>>, vector<1x32xf32>
    %82 = vector.broadcast %81 : vector<1x32xf32> to vector<16x32xf32>
    %83 = arith.addf %80, %82 : vector<16x32xf32>
    %c0_34 = arith.constant 0 : index
    %c0_35 = arith.constant 0 : index
    %c0_36 = arith.constant 0 : index
    %84 = vector.load %arg11[%c0_34, %c0_35, %c0_36] : memref<1x16x32xf32, #tpu.memory_space<vmem>>, vector<1x16x32xf32>
    %85 = vector.shape_cast %84 : vector<1x16x32xf32> to vector<16x32xf32>
    %86 = vector.shape_cast %83 : vector<16x32xf32> to vector<1x16x32xf32>
    tpu.vector_store %arg11[%c0_34, %c0_35, %c0_36], %86 {strides = array<i32>} : memref<1x16x32xf32, #tpu.memory_space<vmem>>, vector<1x16x32xf32>,
    %c0_37 = arith.constant 0 : index
    %c0_38 = arith.constant 0 : index
    %c0_39 = arith.constant 0 : index
    %87 = vector.load %arg8[%c0_37, %c0_38, %c0_39] : memref<1x16x32xf32, #tpu.memory_space<vmem>>, vector<1x16x32xf32>
    %88 = vector.shape_cast %87 : vector<1x16x32xf32> to vector<16x32xf32>
    %89 = arith.addf %83, %88 : vector<16x32xf32>
    %cst_40 = arith.constant 0.000000e+00 : f32
    %90 = vector.broadcast %cst_40 : f32 to vector<16x32xf32>
    %91 = arith.maximumf %89, %90 : vector<16x32xf32>
    %92 = arith.truncf %91 : vector<16x32xf32> to vector<16x32xbf16>
    %c0_41 = arith.constant 0 : index
    %c0_42 = arith.constant 0 : index
    %c0_43 = arith.constant 0 : index
    %93 = vector.load %arg12[%c0_41, %c0_42, %c0_43] : memref<1x16x32xbf16, #tpu.memory_space<vmem>>, vector<1x16x32xbf16>
    %94 = vector.shape_cast %93 : vector<1x16x32xbf16> to vector<16x32xbf16>
    %95 = vector.shape_cast %92 : vector<16x32xbf16> to vector<1x16x32xbf16>
    tpu.vector_store %arg12[%c0_41, %c0_42, %c0_43], %95 {strides = array<i32>} : memref<1x16x32xbf16, #tpu.memory_space<vmem>>, vector<1x16x32xbf16>,
    return
  }
  func.func @transform_0(%arg0: i32, %arg1: memref<2xi32, #tpu.memory_space<smem>>) -> (i32, i32, i32) {
    %c0_i32 = arith.constant 0 : i32
    %c0_i32_0 = arith.constant 0 : i32
    %c0_i32_1 = arith.constant 0 : i32
    return %arg0, %c0_i32, %c0_i32_0 : i32, i32, i32
  }
  func.func @transform_1(%arg0: i32, %arg1: memref<2xi32, #tpu.memory_space<smem>>) -> (i32, i32) {
    %c0_i32 = arith.constant 0 : i32
    %c0_i32_0 = arith.constant 0 : i32
    %c0_i32_1 = arith.constant 0 : i32
    return %c0_i32, %c0_i32_0 : i32, i32
  }
  func.func @transform_2(%arg0: i32, %arg1: memref<2xi32, #tpu.memory_space<smem>>) -> (i32, i32) {
    %c0_i32 = arith.constant 0 : i32
    %c0_i32_0 = arith.constant 0 : i32
    %c0_i32_1 = arith.constant 0 : i32
    return %c0_i32, %c0_i32_0 : i32, i32
  }
  func.func @transform_3(%arg0: i32, %arg1: memref<2xi32, #tpu.memory_space<smem>>) -> (i32, i32, i32) {
    %c0_i32 = arith.constant 0 : i32
    %c0_i32_0 = arith.constant 0 : i32
    %c0_i32_1 = arith.constant 0 : i32
    %c0_i32_2 = arith.constant 0 : i32
    return %c0_i32, %c0_i32_0, %c0_i32_1 : i32, i32, i32
  }
  func.func @transform_4(%arg0: i32, %arg1: memref<2xi32, #tpu.memory_space<smem>>) -> (i32, i32) {
    %c0_i32 = arith.constant 0 : i32
    %c0_i32_0 = arith.constant 0 : i32
    %c0_i32_1 = arith.constant 0 : i32
    return %c0_i32, %c0_i32_0 : i32, i32
  }
  func.func @transform_5(%arg0: i32, %arg1: memref<2xi32, #tpu.memory_space<smem>>) -> (i32, i32) {
    %c0_i32 = arith.constant 0 : i32
    %c0_i32_0 = arith.constant 0 : i32
    %c0_i32_1 = arith.constant 0 : i32
    return %c0_i32, %c0_i32_0 : i32, i32
  }
  func.func @transform_6(%arg0: i32, %arg1: memref<2xi32, #tpu.memory_space<smem>>) -> (i32, i32, i32) {
    %c0_i32 = arith.constant 0 : i32
    %c0_i32_0 = arith.constant 0 : i32
    %c0_i32_1 = arith.constant 0 : i32
    %c0_i32_2 = arith.constant 0 : i32
    return %c0_i32, %c0_i32_0, %c0_i32_1 : i32, i32, i32
  }
  func.func @transform_7(%arg0: i32, %arg1: memref<2xi32, #tpu.memory_space<smem>>) -> (i32, i32, i32) {
    %c0_i32 = arith.constant 0 : i32
    %c0_i32_0 = arith.constant 0 : i32
    %c0_i32_1 = arith.constant 0 : i32
    return %arg0, %c0_i32, %c0_i32_0 : i32, i32, i32
  }
  func.func @transform_8(%arg0: i32, %arg1: memref<2xi32, #tpu.memory_space<smem>>) -> (i32, i32, i32) {
    %c0_i32 = arith.constant 0 : i32
    %c0_i32_0 = arith.constant 0 : i32
    %c0_i32_1 = arith.constant 0 : i32
    return %arg0, %c0_i32, %c0_i32_0 : i32, i32, i32
  }
  func.func @transform_9(%arg0: i32, %arg1: memref<2xi32, #tpu.memory_space<smem>>) -> (i32, i32, i32) {
    %c0_i32 = arith.constant 0 : i32
    %c0_i32_0 = arith.constant 0 : i32
    %c0_i32_1 = arith.constant 0 : i32
    return %arg0, %c0_i32, %c0_i32_0 : i32, i32, i32
  }
  func.func @transform_10(%arg0: i32, %arg1: memref<2xi32, #tpu.memory_space<smem>>) -> (i32, i32, i32) {
    %c0_i32 = arith.constant 0 : i32
    %c0_i32_0 = arith.constant 0 : i32
    %c0_i32_1 = arith.constant 0 : i32
    return %arg0, %c0_i32, %c0_i32_0 : i32, i32, i32
  }
}

</mosaic_0001>

<bundles_post_ra>
// kernel: tpu_custom_call.1
= control target key start
LH: loop header
LB: loop body
LE: loop exit
PB: predicated region body
PF: predicated region fallthrough
CT: control target
= control target key end

     0   :  { %s2149_s0 = inlined_call_operand.vmem [shape: s32[2], index: 0, kind: input, shape index: {}]   ;;  %s2150_s1 = inlined_call_operand.vmem [shape: f32[2,16,6], index: 1, kind: input, shape index: {}]   ;;  %s2151_s2 = inlined_call_operand.vmem [shape: bf16[66,32], index: 2, kind: input, shape index: {}]   ;;  %s2152_s3 = inlined_call_operand.vmem [shape: f32[1,32], index: 3, kind: input, shape index: {}]   ;;  %s2153_s4 = inlined_call_operand.vmem [shape: f32[1,16,32], index: 4, kind: input, shape index: {}]   ;;  %s2154_s5 = inlined_call_operand.vmem [shape: bf16[96,32], index: 5, kind: input, shape index: {}]   ;;  %s2155_s6 = inlined_call_operand.vmem [shape: f32[1,32], index: 6, kind: input, shape index: {}]   ;;  %s2156_s7 = inlined_call_operand.vmem [shape: f32[1,16,32], index: 7, kind: input, shape index: {}]   ;;  %s2157_s8 = inlined_call_operand.hbm [shape: f32[2,16,16], index: 8, kind: output, shape index: {0}]   ;;  %s2158_s9 = inlined_call_operand.hbm [shape: f32[2,16,32], index: 9, kind: output, shape index: {1}]   ;;  %s2159_s10 = inlined_call_operand.hbm [shape: f32[2,16,32], index: 10, kind: output, shape index: {2}]   ;;  %s2160_s11 = inlined_call_operand.hbm [shape: bf16[2,16,32], index: 11, kind: output, shape index: {3}]  }
   0x1   :  { %2165 = sst [smem:[#allocation15_spill]] %s2150_s1  ;;  %s17_s19 = sshll.u32 %s2149_s0, 4  ;;  %s18_s19 = int_to_ptr.vmem [resolvable:$true] %s17_s19 }
   0x2   :  { %2166 = sst [smem:[#allocation16_spill]] %s2151_s2  ;;  %s1541_s20 = scalar_lea.vmem %s18_s19, 16 }
   0x3   :  { %2167 = sst [smem:[#allocation17_spill]] %s2152_s3  ;;  %p1542_p0 = scmp.ne.s32.totalorder %s18_s19, %s1541_s20 }
   0x4   :  { %2168 = sst [smem:[#allocation18_spill]] %s2153_s4  ;;  %p1546_p1 = scmp.lt.s32.totalorder %s18_s19, %s18_s19 }
   0x5   :  { %2169 = sst [smem:[#allocation19_spill]] %s2154_s5  ;;  %p1547_p2 = scmp.lt.s32.totalorder %s1541_s20, %s1541_s20 }
   0x6   :  { %2170 = sst [smem:[#allocation20_spill]] %s2158_s9 }
   0x7   :  { %p1548_p3 = por %p1547_p2, %p1546_p1 }
   0x9   :  { %p1549_p4 = pnand %p1548_p3, %p1542_p0 }
   0xb   :  { %1552 = shalt.err (!%p1549_p4)  }
   0xc   :  { %s1703_s21 = smov [#allocation3]  }
   0xd   :  { %20 = dma.vmem_to_smem %s18_s19, 16, %s1703_s21, [#allocation2] }
   0xe   :  { %1673 = dma.done.wait [#allocation2], 16 }
   0xf   :  { %1674 = vsyncadd [#allocation2], 4294967280 }
  0x10   :  { %22 = sfence }
  0x11   :  { %23 = vsyncpa [#allocation5], 0 }
  0x12   :  { %25 = vsyncpa [#allocation5 + $0x1], 0 }
  0x13   :  { %26 = vsyncpa [#allocation7], 0 }
  0x14   :  { %28 = vsyncpa [#allocation7 + $0x1], 0 }
  0x15   :  { %29 = vsyncpa [#allocation10], 0 }
  0x16   :  { %31 = vsyncpa [#allocation10 + $0x1], 0  ;;  %s1781_s0 = smov 0   ;;  %s1783_s22 = smov 0  }
  0x17   :  { %s1785_s23 = smov 0   ;;  %s1787_s24 = smov 0  }
  0x18 LB: > { %s1802_s25 = sadd.s32 4294967295, %s1701_s24   ;;  %s2161_s26 = sadd.s32 4294967294, %s1701_s24   ;;  %s1701_s24 = sphi %s1787_s24, %s2186_s24   ;;  %s1697_s23 = sphi %s1785_s23, %s2185_s23   ;;  %s1693_s22 = sphi %s1783_s22, %s2184_s22   ;;  %s1689_s0 = sphi %s1781_s0, %s2183_s0  }
  0x19   : > { %s1806_s27 = sadd.s32 1, %s1701_s24   ;;  %s196_s28 = sadd.s32 1, %s1697_s23 }
  0x1a   : > { %s193_s29 = ssub.s32 %s1701_s24, %s1806_s27  ;;  %p206_p5 = scmp.ne.s32.totalorder %s1697_s23, %s1693_s22 }
  0x1b   : > { %p194_p6 = scmp.eq.s32.totalorder %s193_s29, 0  ;;  %p207_p7 = scmp.eq.s32.totalorder %s1802_s25, 1 }
  0x1c   : > { %p212_p8 = scmp.ne.s32.totalorder %s1693_s22, %s1689_s0  ;;  %p213_p9 = scmp.eq.s32.totalorder %s2161_s26, 1 }
  0x1d   : > { %s1819_s30 = scalar_select %p194_p6, %s1697_s23, %s196_s28  }
  0x1e   : > { %p1821_p10 = por %p207_p7, %p206_p5  ;;  %p1825_p11 = por %p213_p9, %p212_p8 }
  0x1f   : > { %p1297_p12 = scmp.ge.s32.totalorder %s1701_s24, 1  ;;  %p335_p13 = scmp.lt.s32.totalorder %s1701_s24, 3 }
  0x21   : > { %p336_p0 = pnand %p1297_p12, %p335_p13 }
  0x22   : > { %p388_p1 = scmp.lt.s32.totalorder (!%p336_p0), %s1802_s25, 1  ;;  %s2173_s1 = sld [smem:[#allocation15_spill]] (!%p336_p0) }
  0x23   : > { %339 = sbr.rel (%p336_p0) target bundleno = 2120 (0x848), region = 48  ;;  %s599_s19 = sld [smem:[#allocation3 + %s1802_s25]] (!%p336_p0) }
  0x24   : > { %s1705_s20 = smov (!%p336_p0), 6   ;;  %s1867_s21 = sand.u32 (!%p336_p0), 1, %s1693_s22  }
  0x25   : > { %s1871_s28 = sshll.u32 (!%p336_p0), %s1867_s21, 4  ;;  %s2174_s2 = sld [smem:[#allocation16_spill]] (!%p336_p0) }
  0x26   : > { %s1879_s29 = scalar_lea.vmem (!%p336_p0), [#allocation4], %s1871_s28  ;;  %s2175_s3 = sld [smem:[#allocation17_spill]] (!%p336_p0) }
  0x27   : > { %s2176_s4 = sld [smem:[#allocation18_spill]] (!%p336_p0)  ;;  %s1927_s16 = scalar_lea.vmem (!%p336_p0), [#allocation6], %s1871_s28 }
  0x28   : > { %s389_s14 = scalar_select %p388_p1, %s1802_s25, 1  ;;  %vm396_vm0 = vcmask 48128   ;;  %v1704_v8 = vmov 0.0   ;;  %v522_v9 = vlaneseq  ;;  %vm534_vm1 = vcmask 130048  }
  0x29   : > { %1395 = vmatprep.subr.bf16.mxu1 %v1704_v8  ;;  %v600_v31 = vstv %s599_s19  ;;  %vm1706_vm3 = vmmov 0   ;;  %vm775_vm6 = vcmask 1040384   ;;  %vm721_vm7 = vcmask 179200   ;;  %s1709_s19 = smov 32   ;;  %s2177_s5 = sld [smem:[#allocation19_spill]] }
  0x2a   : > { %s1344_s15 = sshll.u32 %s389_s14, 4  ;;  %v1846_v11 = vshrl.u32 %v522_v9, 7  ;;  %v587_v30 = vand.u32 127, %v522_v9  ;;  %1405 = vmatprep.mubr.msk.bf16.mxu1 %vm1706_vm3, %v1704_v8  ;;  %s1707_s14 = smov 22   ;;  %vm724_vm8 = vcmask 359424   ;;  %vm771_vm9 = vcmask 539648  }
  0x2b   : > { %s392_s18 = scalar_lea.vmem %s2173_s1, %s1344_s15  ;;  %v1522_v63 = vld [vmem:[%s2174_s2 + $0x20] ss:$0 sps:$4 sm:$0x11]   ;;  %vm820_vm10 = vcmask 261120   ;;  %s2162_s1 = smov 64   ;;  %vm939_vm11 = vcmask 523264  }
  0x2c   : > { %v394_v0 = vld [vmem:[%s392_s18] sm:$0xff]  ;;  %v395_v1 = vld [vmem:[%s392_s18 + $0x8] sm:$0xff]  ;;  %v524_v15 = vsub.s32 0, %v1846_v11  ;;  %vm601_vm2 = vcmp.eq.s32.totalorder %v587_v30, %v600_v31  ;;  %v585_v41 = vadd.s32 8, %v1846_v11  ;;  %vm588_vm4 = vcmp.eq.s32.totalorder %v1846_v11, %v587_v30  ;;  %s1708_s18 = smov 44   ;;  %s1107_s17 = sshll.u32 %s1927_s16, 4  ;;  %s1970_s17 = int_to_ptr.vmem [resolvable:$true] %s1107_s17 }
  0x2d   : > { %1376 = vmatprep.subr.msk.mxu0 %vm396_vm0, %v395_v1  ;;  %v478_v2 = vmul.f32 %v394_v0, %v394_v0  ;;  %v479_v3 = vmul.f32 %v395_v1, %v395_v1  ;;  %1380 = vmatprep.mubr.msk.f32.mxu0 %vm396_vm0, %v394_v0  ;;  %v1308_v32 = vsel %vm601_vm2, 1.0, %v1704_v8  ;;  %v823_v31 = vld [vmem:[%s2176_s4] sm:$0xff]  ;;  %vm998_vm12 = vcmask 785408   ;;  %s2178_s9 = sld [smem:[#allocation20_spill]] }
  0x2e   : > { %1377 = vmatpush3.xpose.msk.msra.mxu0 %vm396_vm0, %v395_v1  ;;  %vm589_vm5 = vcmp.eq.s32.totalorder %v585_v41, %v587_v30 }
  0x2f   : > { %v480_v4 = vsel %vm396_vm0, %v478_v2, 0.0  ;;  %1378 = vmatprep.subr.msk.mxu0 %vm396_vm0, %v394_v0  ;;  %v483_v5 = vsel %vm396_vm0, %v479_v3, 0.0  ;;  %v1524_v2 = vld [vmem:[%s2174_s2 + $0x10] sm:$0xff]   ;;  %v1525_v3 = vld [vmem:[%s2174_s2 + $0x8] sm:$0xff]  }
  0x30   : > { %481 = vadd.xlane.f32.xlu0 %v480_v4 }
  0x32   : > { %1379 = vmatpush3.xpose.msk.msra.mxu0 %vm396_vm0, %v394_v0 }
  0x33   : > { %1383 = vmatprep.subr.bf16.mxu0 %v1704_v8 }
  0x34   : > { %484 = vadd.xlane.f32.xlu0 %v483_v5  ;;  %v1526_v5 = vld [vmem:[%s2174_s2] sm:$0xff]  }
  0x35   : > { %1381 = vmatmul.mubr.msk.f32.vlgmr.msra.gmra.mxu0 %vm396_vm0, %v395_v1 }
  0x36   : > { %1385 = vmatprep.mubr.msk.bf16.mxu0 %vm1706_vm3, %v1704_v8 }
  0xb9   : > { %v482_v6 = vpop.xlane.xlu0 %481 }
  0xba   : > { %490 = vxpose.xlu1.b32.start [1/2] (short) (narrow) %v482_v6, 8 }
  0xbd   : > { %v485_v7 = vpop.xlane.xlu0 %484 }
  0xbe   : > { %491 = vxpose.xlu1.b32.end [2/2] (short) (narrow) %v485_v7, 8 }
  0xf5   : > { %v1382_v10 = vpop.f32.mrf.mxu0 }
  0xf6   : > { %v487_v13 = vmul.f32 2.0, %v1382_v10 }
  0xf7   : > { %v469_v12 = vpop.f32.mrf.mxu0 }
  0xf8   : > { %v486_v14 = vmul.f32 2.0, %v469_v12  ;;  %v489_v17 = vsub.f32 %v485_v7, %v487_v13 }
  0xfa   : > { %v488_v18 = vsub.f32 %v482_v6, %v486_v14 }
 0x136   : > { %v506_v16 = vpop.trf.xlu1 }
 0x137   : > { %v525_v19 = vrot.slane %v506_v16, %v524_v15 }
 0x139   : > { %v526_v20 = vadd.f32 %v525_v19, %v488_v18  ;;  %v527_v21 = vadd.f32 %v525_v19, %v489_v17 }
 0x13b   : > { %v528_v22 = vsub.f32 0.0, %v526_v20  ;;  %v529_v23 = vsub.f32 0.0, %v527_v21 }
 0x13d   : > { %v530_v24 = vmul.f32 1.442695, %v528_v22  ;;  %v532_v25 = vmul.f32 1.442695, %v529_v23 }
 0x13f   : > { %1533 = vpow2.f32 %v530_v24 }
 0x140   : > { %1535 = vpow2.f32 %v532_v25 }
 0x14c   : > { %v1534_v26 = vpop.eup %1533 }
 0x14d   : > { %v1536_v27 = vpop.eup %1535  ;;  %v535_v28 = vsel %vm534_vm1, %v1534_v26, 0.0 }
 0x14e   : > { %v538_v29 = vsel %vm534_vm1, %v1536_v27, 0.0  ;;  %536 = vadd.xlane.f32.xlu0 %v535_v28  ;;  %v1311_v28 = vld [vmem:[%s2175_s3] ss:$0 sm:$0xff] }
 0x14f   : > { %539 = vadd.xlane.f32.xlu1 %v538_v29 }
 0x164   : > { %605 = vrot.lane.b32.xlu0 %v1308_v32, %s1705_s20 }
 0x1d7   : > { %v537_v33 = vpop.xlane.xlu0 %536 }
 0x1d8   : > { %1537 = vrsqrt.f32 %v537_v33  ;;  %v540_v34 = vpop.xlane.xlu1 %539 }
 0x1d9   : > { %1539 = vrsqrt.f32 %v540_v34  ;;  %v824_v34 = vld [vmem:[%s2176_s4 + $0x8] sm:$0xff] }
 0x1db   : > { %v606_v35 = vpop.permute.xlu0 %605 }
 0x1dc   : > { %v1854_v36 = vsel %vm396_vm0, %v394_v0, %v606_v35  ;;  %v1857_v37 = vsel %vm396_vm0, %v395_v1, %v606_v35  ;;  %v777_v0 = vsel %vm775_vm6, %v1522_v63, 0  ;;  %v1523_v1 = vld [vmem:[%s2174_s2 + $0x18] sm:$0xff]  }
 0x1dd   : > { %v610_v38 = vpack.c.bf16 %v1857_v37, %v1854_v36  ;;  %1396 = vmatpush3.bf16.msra.mxu1 %v777_v0 }
 0x1de   : > { %1397 = vmatprep.subr.bf16.mxu1 %v1704_v8 }
 0x1df   : > { %1384 = vmatpush3.bf16.msra.mxu0 %v610_v38 }
 0x1e0   : > { %1389 = vmatprep.subr.bf16.mxu0 %v1704_v8 }
 0x1e1   : > { %1398 = vmatpush3.bf16.msra.mxu1 %v1523_v1 }
 0x1e2   : > { %1399 = vmatprep.subr.bf16.mxu1 %v1704_v8 }
 0x1e5   : > { %v1538_v39 = vpop.eup %1537  ;;  %1400 = vmatpush3.bf16.msra.mxu1 %v1524_v2 }
 0x1e6   : > { %545 = vxpose.xlu0.b32.start [1/2] (short) (narrow) %v1538_v39, 8  ;;  %v1540_v40 = vpop.eup %1539  ;;  %v543_v43 = vmul.f32 %v1538_v39, %v1534_v26  ;;  %1401 = vmatprep.subr.bf16.mxu1 %v1704_v8 }
 0x1e7   : > { %v544_v44 = vmul.f32 %v1540_v40, %v1536_v27 }
 0x1e9   : > { %1402 = vmatpush3.bf16.msra.mxu1 %v1525_v3 }
 0x1ea   : > { %546 = vxpose.xlu0.b32.end [2/2] (short) (narrow) %v1540_v40, 8  ;;  %1403 = vmatprep.subr.bf16.mxu1 %v1704_v8 }
 0x1ed   : > { %1404 = vmatpush3.bf16.msra.mxu1 %v1526_v5 }
 0x1ee   : > { %1421 = vmatprep.subr.bf16.mxu1 %v1704_v8 }
 0x262   : > { %v561_v42 = vpop.trf.xlu0 }
 0x263   : > { %v580_v45 = vrot.slane %v561_v42, %v524_v15 }
 0x265   : > { %v581_v46 = vmul.f32 %v580_v45, %v543_v43  ;;  %v582_v47 = vmul.f32 %v580_v45, %v544_v44 }
 0x267   : > { %v590_v48 = vsub.f32 1.0, %v581_v46  ;;  %v591_v49 = vsub.f32 1.0, %v582_v47  ;;  %v592_v50 = vsub.f32 0.0, %v581_v46  ;;  %v593_v51 = vsub.f32 0.0, %v582_v47 }
 0x268   : > { %v1874_v52 = vpack.c.bf16 %v582_v47, %v581_v46 }
 0x269   : > { %v594_v53 = vsel %vm588_vm4, %v590_v48, %v592_v50  ;;  %v595_v54 = vsel %vm589_vm5, %v591_v49, %v593_v51  ;;  %v1527_v50 = vld [vmem:[%s2177_s5 + $0x28] sm:$0xff]   ;;  %v1528_v51 = vld [vmem:[%s2177_s5 + $0x20] sm:$0xff]  }
 0x26a   : > { %1386 = vmatmul.mubr.msk.bf16.vlgmr.msra.gmra.mxu0 %vm534_vm1, %v1874_v52  ;;  %596 = vst.msk [vmem:[%s1879_s29] sm:$0xff] %vm534_vm1, %v594_v53  ;;  %597 = vst.msk [vmem:[%s1879_s29 + $0x8] sm:$0xff] %vm534_vm1, %v595_v54  ;;  %v1529_v53 = vld [vmem:[%s2177_s5 + $0x18] sm:$0xff]   ;;  %v1531_v54 = vld [vmem:[%s2177_s5 + $0x8] sm:$0xff]  }
 0x26b   : > { %1391 = vmatprep.mubr.msk.bf16.mxu0 %vm1706_vm3, %v1704_v8 }
 0x32a   : > { %v648_v55 = vpop.f32.mrf.mxu0 }
 0x32b   : > { %v655_v58 = vsub.f32 %v1854_v36, %v648_v55 }
 0x32c   : > { %v1387_v56 = vpop.f32.mrf.mxu0 }
 0x32d   : > { %v1532_v56 = vld [vmem:[%s2177_s5] sm:$0xff]  }
 0x32e   : > { %v651_v57 = vpop.f32.mrf.mxu0 }
 0x32f   : > { %v656_v59 = vsub.f32 %v1857_v37, %v651_v57 }
 0x330   : > { %v1388_v60 = vpop.f32.mrf.mxu0 }
 0x331   : > { %v657_v61 = vpack.c.bf16 %v656_v59, %v655_v58  ;;  %v1502_v62 = vpack.i.bf16 %v656_v59, %v655_v58 }
 0x333   : > { %1503 = vrot.lane.b32.xlu1 %v1502_v62, %s1707_s14  ;;  %1390 = vmatpush3.bf16.msra.mxu0 %v657_v61 }
 0x334   : > { %1409 = vmatprep.subr.bf16.mxu0 %v1704_v8 }
 0x336   : > { %1392 = vmatmul.mubr.msk.bf16.vlgmr.msra.gmra.mxu0 %vm534_vm1, %v1874_v52 }
 0x337   : > { %1411 = vmatprep.mubr.msk.bf16.mxu0 %vm1706_vm3, %v1704_v8 }
 0x3a5   : > { %v1504_v17 = vpop.permute.xlu1 %1503 }
 0x3a6   : > { %v1506_v18 = vunpack.i.h.bf16 %v1504_v17  ;;  %v1505_v19 = vunpack.i.l.bf16 %v1504_v17 }
 0x3a8   : > { %v723_v23 = vsel %vm721_vm7, %v1857_v37, %v1506_v18  ;;  %v722_v24 = vsel %vm721_vm7, %v1854_v36, %v1505_v19 }
 0x3f6   : > { %v692_v4 = vpop.f32.mrf.mxu0 }
 0x3f7   : > { %v699_v6 = vsub.f32 %v655_v58, %v692_v4 }
 0x3f8   : > { %v1393_v7 = vpop.f32.mrf.mxu0 }
 0x3f9   : > { %v701_v10 = vmul.f32 2.0, %v699_v6 }
 0x3fa   : > { %v695_v9 = vpop.f32.mrf.mxu0 }
 0x3fb   : > { %v700_v11 = vsub.f32 %v656_v59, %v695_v9  ;;  %v703_v14 = vsub.f32 %v701_v10, %v1854_v36 }
 0x3fc   : > { %v1394_v12 = vpop.f32.mrf.mxu0 }
 0x3fd   : > { %v702_v13 = vmul.f32 2.0, %v700_v11 }
 0x3ff   : > { %v704_v15 = vsub.f32 %v702_v13, %v1857_v37 }
 0x401   : > { %v1507_v16 = vpack.i.bf16 %v704_v15, %v703_v14 }
 0x403   : > { %1508 = vrot.lane.b32.xlu1 %v1507_v16, %s1708_s18  ;;  %s1067_s18 = sand.u32 1, %s1802_s25  }
 0x404   : > { %s1982_s15 = scalar_lea.sflag [#allocation7], %s1067_s18 }
 0x475   : > { %v1509_v20 = vpop.permute.xlu1 %1508 }
 0x476   : > { %v1511_v21 = vunpack.i.h.bf16 %v1509_v20  ;;  %v1510_v22 = vunpack.i.l.bf16 %v1509_v20 }
 0x478   : > { %v726_v25 = vsel %vm724_vm8, %v723_v23, %v1511_v21  ;;  %v725_v26 = vsel %vm724_vm8, %v722_v24, %v1510_v22 }
 0x479   : > { %v736_v27 = vpack.c.bf16 %v726_v25, %v725_v26 }
 0x47b   : > { %1406 = vmatmul.mubr.msk.bf16.vlgmr.msra.gmra.mxu1 %vm771_vm9, %v736_v27 }
 0x47c   : > { %1433 = vmatprep.mubr.msk.bf16.mxu1 %vm1706_vm3, %v1704_v8  ;;  %1422 = vmatpush3.bf16.msra.mxu1 %v1527_v50 }
 0x47d   : > { %1423 = vmatprep.subr.bf16.mxu1 %v1704_v8 }
 0x480   : > { %1424 = vmatpush3.bf16.msra.mxu1 %v1528_v51 }
 0x481   : > { %1425 = vmatprep.subr.bf16.mxu1 %v1704_v8 }
 0x484   : > { %1426 = vmatpush3.bf16.msra.mxu1 %v1529_v53 }
 0x485   : > { %1427 = vmatprep.subr.bf16.mxu1 %v1704_v8 }
 0x53b   : > { %v813_v29 = vpop.f32.mrf.mxu1 }
 0x53c   : > { %v814_v30 = vadd.f32 %v1311_v28, %v813_v29 }
 0x53d   : > { %v1407_v32 = vpop.f32.mrf.mxu1 }
 0x53e   : > { %821 = vst.msk [vmem:[%s1927_s16] sm:$0xff] %vm820_vm10, %v814_v30  ;;  %v825_v35 = vadd.f32 %v823_v31, %v814_v30 }
 0x53f   : > { %v816_v33 = vpop.f32.mrf.mxu1 }
 0x540   : > { %v817_v36 = vadd.f32 %v1311_v28, %v816_v33  ;;  %v827_v39 = vmax.f32 %v825_v35, 0.0 }
 0x541   : > { %v1408_v37 = vpop.f32.mrf.mxu1 }
 0x542   : > { %822 = vst.msk [vmem:[%s1927_s16 + $0x8] sm:$0xff] %vm820_vm10, %v817_v36  ;;  %v826_v38 = vadd.f32 %v824_v34, %v817_v36  ;;  %s1711_s16 = smov [#allocation6]  }
 0x543   : > { %s1557_s2 = sshll.u32 %s1711_s16, 4  ;;  %s1558_s2 = int_to_ptr.vmem [resolvable:$false] %s1557_s2 }
 0x544   : > { %v828_v40 = vmax.f32 %v826_v38, 0.0  ;;  %s1559_s3 = scalar_lea.vmem %s1558_s2, 512  ;;  %p1560_p5 = scmp.lt.s32.totalorder %s1970_s17, %s1558_s2 }
 0x546   : > { %v829_v41 = vpack.c.bf16 %v828_v40, %v827_v39 }
 0x548   : > { %1410 = vmatpush3.bf16.msra.mxu0 %v829_v41 }
 0x549   : > { %1415 = vmatprep.subr.bf16.mxu0 %v1704_v8 }
 0x54b   : > { %1412 = vmatmul.mubr.msk.bf16.vlgmr.msra.gmra.mxu0 %vm534_vm1, %v1874_v52 }
 0x54c   : > { %1417 = vmatprep.mubr.msk.bf16.mxu0 %vm1706_vm3, %v1704_v8 }
 0x60b   : > { %v864_v42 = vpop.f32.mrf.mxu0 }
 0x60c   : > { %v871_v45 = vsub.f32 %v827_v39, %v864_v42 }
 0x60d   : > { %v1413_v43 = vpop.f32.mrf.mxu0 }
 0x60f   : > { %v867_v44 = vpop.f32.mrf.mxu0 }
 0x610   : > { %v872_v46 = vsub.f32 %v828_v40, %v867_v44 }
 0x611   : > { %v1414_v47 = vpop.f32.mrf.mxu0 }
 0x612   : > { %v873_v48 = vpack.c.bf16 %v872_v46, %v871_v45  ;;  %v1512_v49 = vpack.i.bf16 %v872_v46, %v871_v45 }
 0x614   : > { %1513 = vrot.lane.b32.xlu0 %v1512_v49, %s1709_s19  ;;  %1416 = vmatpush3.bf16.msra.mxu0 %v873_v48  ;;  %s1974_s19 = sshll.u32 %s1802_s25, 8 }
 0x615   : > { %s1980_s26 = scalar_lea.hbm %s2178_s9, %s1974_s19 }
 0x617   : > { %1418 = vmatmul.mubr.msk.bf16.vlgmr.msra.gmra.mxu0 %vm534_vm1, %v1874_v52  ;;  %v1530_v52 = vld [vmem:[%s2177_s5 + $0x10] sm:$0xff]  }
 0x618   : > { %1428 = vmatpush3.bf16.msra.mxu1 %v1530_v52 }
 0x619   : > { %1429 = vmatprep.subr.bf16.mxu1 %v1704_v8 }
 0x61c   : > { %1430 = vmatpush3.bf16.msra.mxu1 %v1531_v54 }
 0x61d   : > { %1431 = vmatprep.subr.bf16.mxu1 %v1704_v8 }
 0x620   : > { %1432 = vmatpush3.bf16.msra.mxu1 %v1532_v56 }
 0x686   : > { %v1514_v8 = vpop.permute.xlu0 %1513 }
 0x687   : > { %v1516_v3 = vunpack.i.h.bf16 %v1514_v8  ;;  %v1515_v4 = vunpack.i.l.bf16 %v1514_v8 }
 0x689   : > { %v938_v9 = vsel %vm820_vm10, %v828_v40, %v1516_v3  ;;  %v937_v10 = vsel %vm820_vm10, %v827_v39, %v1515_v4 }
 0x6d7   : > { %v908_v55 = vpop.f32.mrf.mxu0 }
 0x6d8   : > { %v915_v57 = vsub.f32 %v871_v45, %v908_v55 }
 0x6d9   : > { %v1419_v58 = vpop.f32.mrf.mxu0 }
 0x6da   : > { %v917_v60 = vmul.f32 2.0, %v915_v57 }
 0x6db   : > { %v911_v59 = vpop.f32.mrf.mxu0 }
 0x6dc   : > { %v916_v61 = vsub.f32 %v872_v46, %v911_v59  ;;  %v919_v0 = vsub.f32 %v917_v60, %v827_v39 }
 0x6dd   : > { %v1420_v62 = vpop.f32.mrf.mxu0 }
 0x6de   : > { %v918_v63 = vmul.f32 2.0, %v916_v61 }
 0x6e0   : > { %v920_v1 = vsub.f32 %v918_v63, %v828_v40 }
 0x6e2   : > { %v1517_v2 = vpack.i.bf16 %v920_v1, %v919_v0 }
 0x6e4   : > { %1518 = vrot.lane.b32.xlu1 %v1517_v2, %s2162_s1  ;;  %s1553_s1 = scalar_lea.vmem %s1970_s17, 256 }
 0x6e5   : > { %p1554_p2 = scmp.ne.s32.totalorder %s1970_s17, %s1553_s1  ;;  %p1561_p6 = scmp.lt.s32.totalorder %s1559_s3, %s1553_s1 }
 0x6e7   : > { %p1555_p3 = pnand %p1554_p2, %p1821_p10  ;;  %p1562_p7 = por %p1561_p6, %p1560_p5 }
 0x6e9   : > { %p1556_p4 = pneg %p1555_p3 }
 0x6eb   : > { %p1563_p8 = pnand %p1562_p7, %p1556_p4 }
 0x756   : > { %v1519_v5 = vpop.permute.xlu1 %1518 }
 0x757   : > { %v1521_v6 = vunpack.i.h.bf16 %v1519_v5  ;;  %v1520_v7 = vunpack.i.l.bf16 %v1519_v5 }
 0x759   : > { %v941_v11 = vsel %vm939_vm11, %v938_v9, %v1521_v6  ;;  %v940_v12 = vsel %vm939_vm11, %v937_v10, %v1520_v7 }
 0x75a   : > { %v954_v13 = vpack.c.bf16 %v941_v11, %v940_v12 }
 0x75c   : > { %1434 = vmatmul.mubr.msk.bf16.vlgmr.msra.gmra.mxu1 %vm998_vm12, %v954_v13 }
 0x75d   : > { %1566 = shalt.err (!%p1563_p8)
}
 0x75e   : > { %s1567_s18 = scalar_lea.hbm %s1980_s26, 256  ;;  %s1571_s16 = scalar_lea.hbm %s2178_s9, 512 }
 0x75f   : > { %p1568_p9 = scmp.ne.s32.totalorder %s1980_s26, %s1567_s18  ;;  %p1572_p0 = scmp.lt.s32.totalorder %s1980_s26, %s2178_s9 }
 0x760   : > { %p1573_p1 = scmp.lt.s32.totalorder %s1571_s16, %s1567_s18 }
 0x761   : > { %p1569_p12 = pnand %p1568_p9, %p1821_p10 }
 0x762   : > { %p1574_p2 = por %p1573_p1, %p1572_p0 }
 0x763   : > { %p1570_p13 = pneg %p1569_p12 }
 0x765   : > { %p1575_p3 = pnand %p1574_p2, %p1570_p13 }
 0x767   : > { %1578 = shalt.err (!%p1575_p3)
}
 0x768   : > { %s2163_s2 = smov 128   ;;  %s1713_s3 = smov 8  }
 0x769   : > { %1438 = dma.vmem_to_hbm [thread:$0]  (%p1821_p10), %s1970_s17, 256, %s1980_s26, %s1982_s15, %s2163_s2, %s2163_s2, %s1713_s3  }
 0x76a   : > { %s2012_s1 = scalar_lea.hbm %s2157_s8, %s1974_s19  ;;  %s1091_s18 = sshll.u32 %s1879_s29, 4  ;;  %s2015_s18 = int_to_ptr.vmem [resolvable:$true] %s1091_s18 }
 0x76b   : > { %s1063_s20 = scalar_lea.sflag [#allocation5], %s1867_s21  ;;  %s1579_s14 = scalar_lea.vmem %s2015_s18, 256 }
 0x76c   : > { %p1580_p4 = scmp.ne.s32.totalorder %s2015_s18, %s1579_s14  ;;  %s1714_s16 = smov [#allocation4]  }
 0x76d   : > { %s1583_s9 = sshll.u32 %s1714_s16, 4  ;;  %s1584_s9 = int_to_ptr.vmem [resolvable:$false] %s1583_s9 }
 0x76e   : > { %p1581_p5 = pnand %p1580_p4, %p1821_p10  ;;  %s1585_s17 = scalar_lea.vmem %s1584_s9, 512 }
 0x76f   : > { %p1586_p7 = scmp.lt.s32.totalorder %s2015_s18, %s1584_s9  ;;  %p1587_p8 = scmp.lt.s32.totalorder %s1585_s17, %s1579_s14 }
 0x770   : > { %p1582_p6 = pneg %p1581_p5 }
 0x771   : > { %p1588_p9 = por %p1587_p8, %p1586_p7 }
 0x773   : > { %p1589_p12 = pnand %p1588_p9, %p1582_p6 }
 0x775   : > { %1592 = shalt.err (!%p1589_p12)
}
 0x776   : > { %s1593_s29 = scalar_lea.hbm %s2012_s1, 256  ;;  %s1597_s5 = scalar_lea.hbm %s2157_s8, 512 }
 0x777   : > { %p1594_p13 = scmp.ne.s32.totalorder %s2012_s1, %s1593_s29  ;;  %p1598_p2 = scmp.lt.s32.totalorder %s2012_s1, %s2157_s8 }
 0x778   : > { %p1599_p3 = scmp.lt.s32.totalorder %s1597_s5, %s1593_s29 }
 0x779   : > { %p1595_p0 = pnand %p1594_p13, %p1821_p10 }
 0x77a   : > { %p1600_p4 = por %p1599_p3, %p1598_p2 }
 0x77b   : > { %p1596_p1 = pneg %p1595_p0 }
 0x77d   : > { %p1601_p5 = pnand %p1600_p4, %p1596_p1 }
 0x77f   : > { %1604 = shalt.err (!%p1601_p5)
}
 0x780   : > { %s2179_s9 = smov 128   ;;  %v1320_v14 = vld [vmem:[%s2155_s6] ss:$0 sm:$0xff]  ;;  %s380_s26 = scalar_lea.vmem [#allocation8], %s1871_s28  ;;  %v1046_v21 = vld [vmem:[%s2156_s7 + $0x8] sm:$0xff]  ;;  %vm1059_vm13 = vcmask 257024  }
 0x781   : > { %1437 = dma.vmem_to_hbm [thread:$0]  (%p1821_p10), %s2015_s18, 256, %s2012_s1, %s1063_s20, %s2179_s9, %s2179_s9, %s1713_s3  }
 0x782   : > { %v1045_v16 = vld [vmem:[%s2156_s7] sm:$0xff]  ;;  %s1123_s4 = sshll.u32 %s380_s26, 4  ;;  %s1301_s5 = sshll.u32 %s1867_s21, 3  ;;  %s2053_s4 = int_to_ptr.vmem [resolvable:$true] %s1123_s4 }
 0x783   : > { %s2059_s16 = scalar_lea.hbm %s2159_s10, %s1974_s19  ;;  %s1350_s14 = sshll.u32 %s1802_s25, 7 }
 0x784   : > { %s2063_s17 = scalar_lea.vmem [#allocation9], %s1301_s5  ;;  %s1605_s29 = scalar_lea.vmem %s2053_s4, 256 }
 0x785   : > { %p1606_p6 = scmp.ne.s32.totalorder %s2053_s4, %s1605_s29  ;;  %s1715_s1 = smov [#allocation8]  }
 0x786   : > { %s1609_s19 = sshll.u32 %s1715_s1, 4  ;;  %s1610_s19 = int_to_ptr.vmem [resolvable:$false] %s1609_s19 }
 0x787   : > { %p1607_p7 = pnand %p1606_p6, %p1821_p10  ;;  %s1611_s18 = scalar_lea.vmem %s1610_s19, 512 }
 0x788   : > { %p1612_p9 = scmp.lt.s32.totalorder %s2053_s4, %s1610_s19  ;;  %p1613_p12 = scmp.lt.s32.totalorder %s1611_s18, %s1605_s29 }
 0x789   : > { %p1608_p8 = pneg %p1607_p7 }
 0x78a   : > { %p1614_p13 = por %p1613_p12, %p1612_p9 }
 0x78c   : > { %p1615_p0 = pnand %p1614_p13, %p1608_p8 }
 0x81c   : > { %v1036_v15 = vpop.f32.mrf.mxu1 }
 0x81d   : > { %v1037_v17 = vadd.f32 %v1320_v14, %v1036_v15 }
 0x81e   : > { %v1435_v18 = vpop.f32.mrf.mxu1 }
 0x81f   : > { %1043 = vst.msk [vmem:[%s380_s26] sm:$0xff] %vm820_vm10, %v1037_v17  ;;  %v1047_v19 = vadd.f32 %v1045_v16, %v1037_v17 }
 0x820   : > { %v1039_v20 = vpop.f32.mrf.mxu1 }
 0x821   : > { %v1049_v22 = vmax.f32 %v1047_v19, 0.0  ;;  %v1040_v23 = vadd.f32 %v1320_v14, %v1039_v20 }
 0x822   : > { %v1436_v24 = vpop.f32.mrf.mxu1 }
 0x823   : > { %v1345_v25 = vpack.c.bf16 %v1049_v22, %v1049_v22  ;;  %1044 = vst.msk [vmem:[%s380_s26 + $0x8] sm:$0xff] %vm820_vm10, %v1040_v23  ;;  %v1048_v26 = vadd.f32 %v1046_v21, %v1040_v23 }
 0x824   : > { %1618 = shalt.err (!%p1615_p0)
}
 0x825   : > { %s1619_s26 = scalar_lea.hbm %s2059_s16, 256  ;;  %s1623_s20 = scalar_lea.hbm %s2159_s10, 512 }
 0x826   : > { %p1620_p1 = scmp.ne.s32.totalorder %s2059_s16, %s1619_s26  ;;  %p1624_p4 = scmp.lt.s32.totalorder %s2059_s16, %s2159_s10 }
 0x827   : > { %p1625_p5 = scmp.lt.s32.totalorder %s1623_s20, %s1619_s26 }
 0x828   : > { %p1621_p2 = pnand %p1620_p1, %p1821_p10 }
 0x829   : > { %p1626_p6 = por %p1625_p5, %p1624_p4 }
 0x82a   : > { %p1622_p3 = pneg %p1621_p2 }
 0x82c   : > { %p1627_p7 = pnand %p1626_p6, %p1622_p3 }
 0x82e   : > { %1630 = shalt.err (!%p1627_p7)
}
 0x82f   : > { %1439 = dma.vmem_to_hbm [thread:$0]  (%p1821_p10), %s2053_s4, 256, %s2059_s16, %s1982_s15, %s2179_s9, %s2179_s9, %s1713_s3   ;;  %v1050_v27 = vmax.f32 %v1048_v26, 0.0 }
 0x830   : > { %1060 = vst.msk [vmem:[%s2063_s17] sm:$0xf] %vm1059_vm13, %v1345_v25  ;;  %s2097_s19 = scalar_lea.hbm %s2160_s11, %s1350_s14  ;;  %s2180_s18 = sshll.u32 %s2063_s17, 4  ;;  %s2101_s18 = int_to_ptr.vmem [resolvable:$true] %s2180_s18 }
 0x831   : > { %v1346_v28 = vpack.c.bf16 %v1050_v27, %v1050_v27  ;;  %s1078_s26 = scalar_lea.sflag [#allocation10], %s1867_s21  ;;  %s1631_s15 = scalar_lea.vmem %s2101_s18, 128 }
 0x832   : > { %p1632_p8 = scmp.ne.s32.totalorder %s2101_s18, %s1631_s15  ;;  %s1716_s25 = smov [#allocation9]  }
 0x833   : > { %1061 = vst.msk [vmem:[%s2063_s17 + $0x4] sm:$0xf] %vm1059_vm13, %v1346_v28  ;;  %s1635_s3 = sshll.u32 %s1716_s25, 4  ;;  %s1636_s3 = int_to_ptr.vmem [resolvable:$false] %s1635_s3 }
 0x834   : > { %p1633_p9 = pnand %p1632_p8, %p1821_p10  ;;  %s1637_s9 = scalar_lea.vmem %s1636_s3, 256 }
 0x835   : > { %p1638_p13 = scmp.lt.s32.totalorder %s2101_s18, %s1636_s3  ;;  %p1639_p0 = scmp.lt.s32.totalorder %s1637_s9, %s1631_s15 }
 0x836   : > { %p1634_p12 = pneg %p1633_p9 }
 0x837   : > { %p1640_p1 = por %p1639_p0, %p1638_p13 }
 0x839   : > { %p1641_p2 = pnand %p1640_p1, %p1634_p12 }
 0x83b   : > { %1644 = shalt.err (!%p1641_p2)
}
 0x83c   : > { %s1645_s4 = scalar_lea.hbm %s2097_s19, 128  ;;  %s1649_s17 = scalar_lea.hbm %s2160_s11, 256 }
 0x83d   : > { %p1646_p3 = scmp.ne.s32.totalorder %s2097_s19, %s1645_s4  ;;  %p1650_p6 = scmp.lt.s32.totalorder %s2097_s19, %s2160_s11 }
 0x83e   : > { %p1651_p7 = scmp.lt.s32.totalorder %s1649_s17, %s1645_s4 }
 0x83f   : > { %p1647_p4 = pnand %p1646_p3, %p1821_p10 }
 0x840   : > { %p1652_p8 = por %p1651_p7, %p1650_p6 }
 0x841   : > { %p1648_p5 = pneg %p1647_p4 }
 0x843   : > { %p1653_p9 = pnand %p1652_p8, %p1648_p5 }
 0x845   : > { %1656 = shalt.err (!%p1653_p9)
}
 0x846   : > { %s1717_s20 = smov 4   ;;  %s2181_s1 = smov 64  }
 0x847   : > { %1440 = dma.vmem_to_hbm [thread:$0]  (%p1821_p10), %s2101_s18, 128, %s2097_s19, %s1078_s26, %s2181_s1, %s2181_s1, %s1717_s20  }
 0x848 PF: > { %p1458_p12 = scmp.ge.s32.totalorder %s1701_s24, 2  ;;  %s1154_s2 = sand.u32 1, %s1689_s0  }
 0x849   : > { %s1155_s29 = scalar_lea.sflag [#allocation5], %s1154_s2 }
 0x84a   : > { %p1446_p13 = pnand %p1458_p12, %p1825_p11 }
 0x84c   : > { %p1447_p0 = pneg %p1446_p13 }
 0x84e   : > { %1676 = dma.done.wait (%p1447_p0), %s1155_s29, 256  }
 0x84f   : > { %1678 = vsyncadd (%p1447_p0), %s1155_s29, 4294967040  ;;  %s2182_s12 = sadd.s32 4294967294, %s1701_s24  }
 0x850   : > { %s1163_s15 = sand.u32 1, %s2182_s12  }
 0x851   : > { %s1164_s25 = scalar_lea.sflag [#allocation7], %s1163_s15 }
 0x852   : > { %1680 = dma.done.wait (%p1447_p0), %s1164_s25, 512  }
 0x853   : > { %1682 = vsyncadd (%p1447_p0), %s1164_s25, 4294966784  ;;  %s1182_s21 = scalar_lea.sflag [#allocation10], %s1154_s2 }
 0x854   : > { %1684 = dma.done.wait (%p1447_p0), %s1182_s21, 128  }
 0x855   : > { %1686 = vsyncadd (%p1447_p0), %s1182_s21, 4294967168  ;;  %p34_p10 = scmp.ge.s32.totalorder %s1806_s27, 4   ;;  %s2183_s0 = smov %s1693_s22 }
 0x856   : > { %s2184_s22 = smov %s1697_s23  ;;  %s2185_s23 = smov %s1819_s30 }
 0x857   : > { %s2186_s24 = smov %s1806_s27  ;;  %36 = sbr.rel (!%p34_p10) target bundleno = 24 (0x18), region = 132 }
 0x85c   :  { %1187 = vsyncpa [#allocation5], 1 }
 0x85d   :  { %1189 = vsyncpa [#allocation5 + $0x1], 1 }
 0x85e   :  { %1190 = vsyncpa [#allocation7], 1 }
 0x85f   :  { %1192 = vsyncpa [#allocation7 + $0x1], 1 }
 0x860   :  { %1193 = vsyncpa [#allocation10], 1 }
 0x861   :  { %1195 = vsyncpa [#allocation10 + $0x1], 1 }

</bundles_post_ra>
